<compile_context>
chip_gen: v6e
topology: v6e:2x2x1
jax: 0.10.0
libtpu: 0.0.40
codegen_flags: <defaults>
</compile_context>

<pallas_src>
import jax
import jax.numpy as jnp
from jax import lax
from jax.experimental import pallas as pl
from jax.experimental.pallas import tpu as pltpu


_LANE = 128        # lane-pad feature dims to multiples of this
_SUBLANE = 8       # batch-tile granularity
_MAX_TILE = 512    # batch-tile rows (sweet spot for amortizing per-step cost)

# Set to jnp.bfloat16 on v6e/v7x for large hidden dims (f32 accumulate is kept
# via preferred_element_type).  f32 here keeps exact parity at toy sizes.
_COMPUTE_DTYPE = jnp.float32


def _round_up(x, m):
    return ((x + m - 1) // m) * m


# ---------------------------------------------------------------------------
# Fused kernel: entire MLP chain in one body; activations never leave VMEM.
# ---------------------------------------------------------------------------
def _make_mlp_kernel(num_mid_layers, out_features_true, compute_dtype):

    def maybe_cast(a):
        return a if compute_dtype == jnp.float32 else a.astype(compute_dtype)

    def kernel(x_ref, w0_ref, b0_ref, wm_ref, bm_ref, wl_ref, bl_ref, o_ref):
        # ---- first layer: Linear + tanh ----
        h = jnp.tanh(
            jnp.dot(maybe_cast(x_ref[...]), w0_ref[...],
                    preferred_element_type=jnp.float32) + b0_ref[...])

        # ---- hidden->hidden layers (stacked [L, Hp, Hp] weights) ----
        def layer(l, h):
            y = jnp.dot(maybe_cast(h), wm_ref[l],
                        preferred_element_type=jnp.float32) + bm_ref[l]
            return jnp.tanh(y)

        if num_mid_layers <= 8:
            for l in range(num_mid_layers):          # static unroll, static slices
                h = layer(l, h)
        else:
            h = lax.fori_loop(0, num_mid_layers, layer, h)

        # ---- final layer + softmax masked to the true output columns ----
        y = jnp.dot(maybe_cast(h), wl_ref[...],
                    preferred_element_type=jnp.float32) + bl_ref[...]
        col = lax.broadcasted_iota(jnp.int32, y.shape, dimension=1)
        mask = col < out_features_true
        m = jnp.max(jnp.where(mask, y, -jnp.inf), axis=-1, keepdims=True)
        e = jnp.where(mask, jnp.exp(y - m), 0.0)
        denom = jnp.sum(e, axis=-1, keepdims=True)
        o_ref[...] = (e / denom).astype(o_ref.dtype)   # exact divide (parity)

    return kernel


# ---------------------------------------------------------------------------
# Wrapper: pad to lane-dense shapes, tile the batch, one pallas_call.
# ---------------------------------------------------------------------------
def _pad2(a, rows, cols):
    return jnp.pad(a, ((0, rows - a.shape[0]), (0, cols - a.shape[1])))


def _pad_bias(b, cols):
    b2 = b.reshape(1, -1)
    return jnp.pad(b2, ((0, 0), (0, cols - b2.shape[1])))


def _fused_mlp(x, flat_params):
    ws = list(flat_params[0::2])
    bs = list(flat_params[1::2])
    num_layers = len(ws)
    assert num_layers >= 3, "Mlp always has >= 3 Linear layers"

    batch, in_f = x.shape
    hidden = ws[0].shape[1]
    out_f = ws[-1].shape[1]
    num_mid = num_layers - 2                      # hiddenlayers + 1

    # Lane-dense padded feature dims.
    in_p = _round_up(in_f, _LANE)
    hid_p = _round_up(hidden, _LANE)
    out_p = _round_up(out_f, _LANE)

    # Batch tile / padded batch.
    tile = min(_MAX_TILE, _round_up(batch, _SUBLANE))
    batch_p = _round_up(batch, tile)
    grid_steps = batch_p // tile

    cd = _COMPUTE_DTYPE
    x_p = _pad2(x.astype(jnp.float32), batch_p, in_p)
    w0_p = _pad2(ws[0].astype(jnp.float32), in_p, hid_p).astype(cd)
    b0_p = _pad_bias(bs[0].astype(jnp.float32), hid_p)
    wm_p = jnp.stack([_pad2(w.astype(jnp.float32), hid_p, hid_p).astype(cd)
                      for w in ws[1:-1]])                       # (L, Hp, Hp)
    bm_p = jnp.stack([_pad_bias(b.astype(jnp.float32), hid_p)
                      for b in bs[1:-1]])                       # (L, 1, Hp)
    wl_p = _pad2(ws[-1].astype(jnp.float32), hid_p, out_p).astype(cd)
    bl_p = _pad_bias(bs[-1].astype(jnp.float32), out_p)

    # VMEM budget: params once (single-buffered), x/out tiles double-buffered,
    # plus one live activation slab.  Cap at 48 MiB so it fits v7x's 64 MiB.
    esize = jnp.dtype(cd).itemsize
    param_bytes = (in_p * hid_p + num_mid * hid_p * hid_p + hid_p * out_p) * esize \
                  + (hid_p * (num_mid + 1) + out_p) * 4
    io_bytes = 2 * 4 * tile * (in_p + out_p)
    act_bytes = 2 * 4 * tile * hid_p
    need = param_bytes + io_bytes + act_bytes
    vmem_limit = int(min(max(2 * need, 32 * 1024 * 1024), 48 * 1024 * 1024))

    kernel = _make_mlp_kernel(num_mid, out_f, cd)
    vmem = pltpu.MemorySpace.VMEM

    out_padded = pl.pallas_call(
        kernel,
        out_shape=jax.ShapeDtypeStruct((batch_p, out_p), jnp.float32),
        grid=(grid_steps,),
        in_specs=[pl.BlockSpec((tile, in_p), lambda i: (i, 0))] +
                 [pl.BlockSpec(memory_space=vmem)] * 6,   # params: VMEM-resident, single-buffered
        out_specs=pl.BlockSpec((tile, out_p), lambda i: (i, 0)),
        compiler_params=pltpu.CompilerParams(
            dimension_semantics=("parallel",),
            vmem_limit_bytes=vmem_limit),
    )(x_p, w0_p, b0_p, wm_p, bm_p, wl_p, bl_p)

    return out_padded[:batch, :out_f]


@jax.jit
def mlp_forward(x, *flat_params):
    # flat_params = (w0, b0, w1, b1, ...); w stored [in, out], b stored [out].
    return _fused_mlp(x, flat_params)


# ---------------------------------------------------------------------------
# Parameter init (matches nn.Linear's U(-1/sqrt(fan_in), +1/sqrt(fan_in)))
# ---------------------------------------------------------------------------
def init_mlp_params(key, input_neurons, hidden_neurons, output_neurons,
                    hiddenlayers):
    dims = [input_neurons, hidden_neurons]
    dims += [hidden_neurons] * (hiddenlayers + 1)   # Linear(hidden, hidden) x (hiddenlayers+1)
    dims += [output_neurons]

    params = []
    for fan_in, fan_out in zip(dims[:-1], dims[1:]):
        key, kw, kb = jax.random.split(key, 3)
        bound = 1.0 / jnp.sqrt(jnp.float32(fan_in))
        w = jax.random.uniform(kw, (fan_in, fan_out), jnp.float32,
                               minval=-bound, maxval=bound)   # stored [in, out]
        b = jax.random.uniform(kb, (fan_out,), jnp.float32,
                               minval=-bound, maxval=bound)
        params.append((w, b))
    return params


def mlp_reference(x, params):
    """Pure-JAX reference of the PyTorch forward."""
    h = x
    for w, b in params[:-1]:
        h = jnp.tanh(h @ w + b)
    w, b = params[-1]
    return jax.nn.softmax(h @ w + b, axis=-1)


if __name__ == "__main__":
    input_neurons = 16
    hidden_neurons = 32
    output_neurons = 8
    hiddenlayers = 1
    batch = 4

    key = jax.random.PRNGKey(0)
    key, kx = jax.random.split(key)
    x = jax.random.normal(kx, (batch, input_neurons), jnp.float32)

    params = init_mlp_params(key, input_neurons, hidden_neurons,
                             output_neurons, hiddenlayers)
    flat = [p for pair in params for p in pair]

    out = mlp_forward(x, *flat)
    out = jax.block_until_ready(out)

    ref = mlp_reference(x, params)
    assert out.shape == (batch, output_neurons)
    assert jnp.allclose(out, ref, rtol=1e-4, atol=1e-4), \
        f"max abs err {float(jnp.max(jnp.abs(out - ref)))}"
    # exact softmax divide: rows sum to 1 tightly
    assert jnp.allclose(jnp.sum(out, axis=-1), 1.0, atol=1e-5)

    print("KERNEL_OK")
</pallas_src>

<mosaic_0001>
module attributes {stable_mosaic.version = 11 : i64} {
  func.func @kernel(%arg0: i32, %arg1: memref<8x128xf32, #tpu.memory_space<vmem>>, %arg2: memref<128x128xf32, #tpu.memory_space<vmem>>, %arg3: memref<1x128xf32, #tpu.memory_space<vmem>>, %arg4: memref<2x128x128xf32, #tpu.memory_space<vmem>>, %arg5: memref<2x1x128xf32, #tpu.memory_space<vmem>>, %arg6: memref<128x128xf32, #tpu.memory_space<vmem>>, %arg7: memref<1x128xf32, #tpu.memory_space<vmem>>, %arg8: memref<8x128xf32, #tpu.memory_space<vmem>>) attributes {dimension_semantics = [#tpu.dimension_semantics<parallel>], iteration_bounds = array<i64: 1>, scalar_prefetch = 0 : i64, scratch_operands = 0 : i64, tpu.core_type = #tpu.core_type<tc>, window_params = [{transform_indices = @transform_0, window_bounds = array<i64: 8, 128>}, {pipeline_mode = #tpu.pipeline_mode<synchronous>, transform_indices = @transform_1, window_bounds = array<i64: 128, 128>}, {pipeline_mode = #tpu.pipeline_mode<synchronous>, transform_indices = @transform_2, window_bounds = array<i64: 1, 128>}, {pipeline_mode = #tpu.pipeline_mode<synchronous>, transform_indices = @transform_3, window_bounds = array<i64: 2, 128, 128>}, {pipeline_mode = #tpu.pipeline_mode<synchronous>, transform_indices = @transform_4, window_bounds = array<i64: 2, 1, 128>}, {pipeline_mode = #tpu.pipeline_mode<synchronous>, transform_indices = @transform_5, window_bounds = array<i64: 128, 128>}, {pipeline_mode = #tpu.pipeline_mode<synchronous>, transform_indices = @transform_6, window_bounds = array<i64: 1, 128>}, {transform_indices = @transform_7, window_bounds = array<i64: 8, 128>}]} {
    %c0 = arith.constant 0 : index
    %c0_0 = arith.constant 0 : index
    %0 = vector.load %arg1[%c0, %c0_0] : memref<8x128xf32, #tpu.memory_space<vmem>>, vector<8x128xf32>
    %c0_1 = arith.constant 0 : index
    %c0_2 = arith.constant 0 : index
    %1 = vector.load %arg2[%c0_1, %c0_2] : memref<128x128xf32, #tpu.memory_space<vmem>>, vector<128x128xf32>
    %cst = arith.constant dense<0.000000e+00> : vector<8x128xf32>
    %2 = tpu.matmul %0, %1, %cst {dimension_numbers = #tpu.dot_dimension_numbers<[1], [0], [0], [1], [0, 0, 1, 1], [], []>} : vector<8x128xf32>, vector<128x128xf32>, vector<8x128xf32> -> vector<8x128xf32>
    %c0_3 = arith.constant 0 : index
    %c0_4 = arith.constant 0 : index
    %3 = vector.load %arg3[%c0_3, %c0_4] : memref<1x128xf32, #tpu.memory_space<vmem>>, vector<1x128xf32>
    %4 = vector.broadcast %3 : vector<1x128xf32> to vector<8x128xf32>
    %5 = arith.addf %2, %4 : vector<8x128xf32>
    %6 = math.tanh %5 : vector<8x128xf32>
    %c0_5 = arith.constant 0 : index
    %c0_6 = arith.constant 0 : index
    %c0_7 = arith.constant 0 : index
    %7 = vector.load %arg4[%c0_5, %c0_6, %c0_7] : memref<2x128x128xf32, #tpu.memory_space<vmem>>, vector<1x128x128xf32>
    %8 = vector.shape_cast %7 : vector<1x128x128xf32> to vector<128x128xf32>
    %cst_8 = arith.constant dense<0.000000e+00> : vector<8x128xf32>
    %9 = tpu.matmul %6, %8, %cst_8 {dimension_numbers = #tpu.dot_dimension_numbers<[1], [0], [0], [1], [0, 0, 1, 1], [], []>} : vector<8x128xf32>, vector<128x128xf32>, vector<8x128xf32> -> vector<8x128xf32>
    %c0_9 = arith.constant 0 : index
    %c0_10 = arith.constant 0 : index
    %c0_11 = arith.constant 0 : index
    %10 = vector.load %arg5[%c0_9, %c0_10, %c0_11] : memref<2x1x128xf32, #tpu.memory_space<vmem>>, vector<1x1x128xf32>
    %11 = vector.shape_cast %10 : vector<1x1x128xf32> to vector<1x128xf32>
    %12 = vector.broadcast %11 : vector<1x128xf32> to vector<8x128xf32>
    %13 = arith.addf %9, %12 : vector<8x128xf32>
    %14 = math.tanh %13 : vector<8x128xf32>
    %c1 = arith.constant 1 : index
    %c0_12 = arith.constant 0 : index
    %c0_13 = arith.constant 0 : index
    %15 = vector.load %arg4[%c1, %c0_12, %c0_13] : memref<2x128x128xf32, #tpu.memory_space<vmem>>, vector<1x128x128xf32>
    %16 = vector.shape_cast %15 : vector<1x128x128xf32> to vector<128x128xf32>
    %cst_14 = arith.constant dense<0.000000e+00> : vector<8x128xf32>
    %17 = tpu.matmul %14, %16, %cst_14 {dimension_numbers = #tpu.dot_dimension_numbers<[1], [0], [0], [1], [0, 0, 1, 1], [], []>} : vector<8x128xf32>, vector<128x128xf32>, vector<8x128xf32> -> vector<8x128xf32>
    %c1_15 = arith.constant 1 : index
    %c0_16 = arith.constant 0 : index
    %c0_17 = arith.constant 0 : index
    %18 = vector.load %arg5[%c1_15, %c0_16, %c0_17] : memref<2x1x128xf32, #tpu.memory_space<vmem>>, vector<1x1x128xf32>
    %19 = vector.shape_cast %18 : vector<1x1x128xf32> to vector<1x128xf32>
    %20 = vector.broadcast %19 : vector<1x128xf32> to vector<8x128xf32>
    %21 = arith.addf %17, %20 : vector<8x128xf32>
    %22 = math.tanh %21 : vector<8x128xf32>
    %c0_18 = arith.constant 0 : index
    %c0_19 = arith.constant 0 : index
    %23 = vector.load %arg6[%c0_18, %c0_19] : memref<128x128xf32, #tpu.memory_space<vmem>>, vector<128x128xf32>
    %cst_20 = arith.constant dense<0.000000e+00> : vector<8x128xf32>
    %24 = tpu.matmul %22, %23, %cst_20 {dimension_numbers = #tpu.dot_dimension_numbers<[1], [0], [0], [1], [0, 0, 1, 1], [], []>} : vector<8x128xf32>, vector<128x128xf32>, vector<8x128xf32> -> vector<8x128xf32>
    %c0_21 = arith.constant 0 : index
    %c0_22 = arith.constant 0 : index
    %25 = vector.load %arg7[%c0_21, %c0_22] : memref<1x128xf32, #tpu.memory_space<vmem>>, vector<1x128xf32>
    %26 = vector.broadcast %25 : vector<1x128xf32> to vector<8x128xf32>
    %27 = arith.addf %24, %26 : vector<8x128xf32>
    %28 = tpu.iota {dimensions = array<i32: 1>} : vector<8x128xi32>
    %c8_i32 = arith.constant 8 : i32
    %29 = vector.broadcast %c8_i32 : i32 to vector<8x128xi32>
    %30 = arith.cmpi slt, %28, %29 : vector<8x128xi32>
    %cst_23 = arith.constant 0xFF800000 : f32
    %31 = vector.broadcast %cst_23 : f32 to vector<8x128xf32>
    %32 = arith.select %30, %27, %31 : vector<8x128xi1>, vector<8x128xf32>
    %cst_24 = arith.constant dense<0xFF800000> : vector<8xf32>
    %33 = vector.multi_reduction <maximumf>, %32, %cst_24 [1] : vector<8x128xf32> to vector<8xf32>
    %34 = vector.shape_cast %33 : vector<8xf32> to vector<8x1xf32>
    %35 = vector.broadcast %34 : vector<8x1xf32> to vector<8x128xf32>
    %36 = arith.subf %27, %35 : vector<8x128xf32>
    %37 = math.exp %36 : vector<8x128xf32>
    %cst_25 = arith.constant 0.000000e+00 : f32
    %38 = vector.broadcast %cst_25 : f32 to vector<8x128xf32>
    %39 = arith.select %30, %37, %38 : vector<8x128xi1>, vector<8x128xf32>
    %cst_26 = arith.constant dense<0.000000e+00> : vector<8xf32>
    %40 = vector.multi_reduction <add>, %39, %cst_26 [1] : vector<8x128xf32> to vector<8xf32>
    %41 = vector.shape_cast %40 : vector<8xf32> to vector<8x1xf32>
    %42 = vector.broadcast %41 : vector<8x1xf32> to vector<8x128xf32>
    %43 = arith.divf %39, %42 : vector<8x128xf32>
    %c0_27 = arith.constant 0 : index
    %c0_28 = arith.constant 0 : index
    %44 = vector.load %arg8[%c0_27, %c0_28] : memref<8x128xf32, #tpu.memory_space<vmem>>, vector<8x128xf32>
    tpu.vector_store %arg8[%c0_27, %c0_28], %43 {strides = array<i32>} : memref<8x128xf32, #tpu.memory_space<vmem>>, vector<8x128xf32>,
    return
  }
  func.func @transform_0(%arg0: i32) -> (i32, i32) {
    %c0_i32 = arith.constant 0 : i32
    %c0_i32_0 = arith.constant 0 : i32
    return %arg0, %c0_i32 : i32, i32
  }
  func.func @transform_1(%arg0: i32) -> (i32, i32) {
    %c0_i32 = arith.constant 0 : i32
    %c0_i32_0 = arith.constant 0 : i32
    %c0_i32_1 = arith.constant 0 : i32
    return %c0_i32, %c0_i32_0 : i32, i32
  }
  func.func @transform_2(%arg0: i32) -> (i32, i32) {
    %c0_i32 = arith.constant 0 : i32
    %c0_i32_0 = arith.constant 0 : i32
    %c0_i32_1 = arith.constant 0 : i32
    return %c0_i32, %c0_i32_0 : i32, i32
  }
  func.func @transform_3(%arg0: i32) -> (i32, i32, i32) {
    %c0_i32 = arith.constant 0 : i32
    %c0_i32_0 = arith.constant 0 : i32
    %c0_i32_1 = arith.constant 0 : i32
    %c0_i32_2 = arith.constant 0 : i32
    return %c0_i32, %c0_i32_0, %c0_i32_1 : i32, i32, i32
  }
  func.func @transform_4(%arg0: i32) -> (i32, i32, i32) {
    %c0_i32 = arith.constant 0 : i32
    %c0_i32_0 = arith.constant 0 : i32
    %c0_i32_1 = arith.constant 0 : i32
    %c0_i32_2 = arith.constant 0 : i32
    return %c0_i32, %c0_i32_0, %c0_i32_1 : i32, i32, i32
  }
  func.func @transform_5(%arg0: i32) -> (i32, i32) {
    %c0_i32 = arith.constant 0 : i32
    %c0_i32_0 = arith.constant 0 : i32
    %c0_i32_1 = arith.constant 0 : i32
    return %c0_i32, %c0_i32_0 : i32, i32
  }
  func.func @transform_6(%arg0: i32) -> (i32, i32) {
    %c0_i32 = arith.constant 0 : i32
    %c0_i32_0 = arith.constant 0 : i32
    %c0_i32_1 = arith.constant 0 : i32
    return %c0_i32, %c0_i32_0 : i32, i32
  }
  func.func @transform_7(%arg0: i32) -> (i32, i32) {
    %c0_i32 = arith.constant 0 : i32
    %c0_i32_0 = arith.constant 0 : i32
    return %arg0, %c0_i32 : i32, i32
  }
}

</mosaic_0001>

<bundles_post_ra>
// kernel: mlp_forward.1
= control target key start
LH: loop header
LB: loop body
LE: loop exit
PB: predicated region body
PF: predicated region fallthrough
CT: control target
= control target key end

     0   :  { %v664_v0 = vmov 0.0   ;;  %vm665_vm0 = vmmov 0   ;;  %s988_s1 = inlined_call_operand.vmem [shape: f32[128,128], index: 1, kind: input, shape index: {}]   ;;  %s989_s3 = inlined_call_operand.vmem [shape: f32[2,128,128], index: 3, kind: input, shape index: {}]   ;;  %s990_s0 = inlined_call_operand.vmem [shape: f32[8,128], index: 0, kind: input, shape index: {}]   ;;  %s991_s2 = inlined_call_operand.vmem [shape: f32[1,128], index: 2, kind: input, shape index: {}]   ;;  %s992_s5 = inlined_call_operand.vmem [shape: f32[128,128], index: 5, kind: input, shape index: {}]   ;;  %s993_s4 = inlined_call_operand.vmem [shape: f32[2,1,128], index: 4, kind: input, shape index: {}]   ;;  %s994_s6 = inlined_call_operand.vmem [shape: f32[1,128], index: 6, kind: input, shape index: {}]   ;;  %s995_s7 = inlined_call_operand.vmem [shape: f32[8,128], index: 7, kind: output, shape index: {}]  }
   0x1   :  { %512 = vmatprep.subr.mxu0 %v664_v0  ;;  %v42_v1 = vld [vmem:[%s988_s1 + $0x78] sm:$0xff]  ;;  %v41_v2 = vld [vmem:[%s988_s1 + $0x70] sm:$0xff]  ;;  %544 = vmatprep.mubr.msk.f32.mxu0 %vm665_vm0, %v664_v0  ;;  %v40_v3 = vld [vmem:[%s988_s1 + $0x68] sm:$0xff] }
   0x2   :  { %513 = vmatpush3.msra.mxu0 %v42_v1  ;;  %547 = vmatprep.subr.mxu1 %v664_v0  ;;  %v39_v4 = vld [vmem:[%s988_s1 + $0x60] sm:$0xff]  ;;  %v136_v5 = vld [vmem:[%s989_s3 + $0x78] sm:$0xff]  ;;  %v135_v7 = vld [vmem:[%s989_s3 + $0x70] sm:$0xff] }
   0x3   :  { %514 = vmatprep.subr.mxu0 %v664_v0  ;;  %579 = vmatprep.mubr.msk.f32.mxu1 %vm665_vm0, %v664_v0  ;;  %v38_v6 = vld [vmem:[%s988_s1 + $0x58] sm:$0xff]  ;;  %v134_v8 = vld [vmem:[%s989_s3 + $0x68] sm:$0xff]  ;;  %v37_v9 = vld [vmem:[%s988_s1 + $0x50] sm:$0xff] }
   0x4   :  { %515 = vmatpush3.msra.mxu0 %v41_v2  ;;  %548 = vmatpush3.msra.mxu1 %v136_v5  ;;  %v133_v10 = vld [vmem:[%s989_s3 + $0x60] sm:$0xff]  ;;  %v36_v11 = vld [vmem:[%s988_s1 + $0x48] sm:$0xff]  ;;  %v132_v12 = vld [vmem:[%s989_s3 + $0x58] sm:$0xff] }
   0x5   :  { %516 = vmatprep.subr.mxu0 %v664_v0  ;;  %549 = vmatprep.subr.mxu1 %v664_v0  ;;  %v35_v13 = vld [vmem:[%s988_s1 + $0x40] sm:$0xff]  ;;  %v131_v14 = vld [vmem:[%s989_s3 + $0x50] sm:$0xff]  ;;  %v34_v15 = vld [vmem:[%s988_s1 + $0x38] sm:$0xff] }
   0x6   :  { %517 = vmatpush3.msra.mxu0 %v40_v3  ;;  %550 = vmatpush3.msra.mxu1 %v135_v7  ;;  %v130_v16 = vld [vmem:[%s989_s3 + $0x48] sm:$0xff]  ;;  %v33_v17 = vld [vmem:[%s988_s1 + $0x30] sm:$0xff]  ;;  %v31_v19 = vld [vmem:[%s988_s1 + $0x20] sm:$0xff] }
   0x7   :  { %518 = vmatprep.subr.mxu0 %v664_v0  ;;  %551 = vmatprep.subr.mxu1 %v664_v0  ;;  %v32_v18 = vld [vmem:[%s988_s1 + $0x28] sm:$0xff]  ;;  %v30_v20 = vld [vmem:[%s988_s1 + $0x18] sm:$0xff]  ;;  %v29_v21 = vld [vmem:[%s988_s1 + $0x10] sm:$0xff] }
   0x8   :  { %519 = vmatpush3.msra.mxu0 %v39_v4  ;;  %552 = vmatpush3.msra.mxu1 %v134_v8  ;;  %v28_v22 = vld [vmem:[%s988_s1 + $0x8] sm:$0xff]  ;;  %v27_v23 = vld [vmem:[%s988_s1] sm:$0xff]  ;;  %v128_v26 = vld [vmem:[%s989_s3 + $0x38] sm:$0xff] }
   0x9   :  { %520 = vmatprep.subr.mxu0 %v664_v0  ;;  %553 = vmatprep.subr.mxu1 %v664_v0  ;;  %v26_v24 = vld [vmem:[%s990_s0] sm:$0xff]  ;;  %v127_v27 = vld [vmem:[%s989_s3 + $0x30] sm:$0xff]  ;;  %v126_v28 = vld [vmem:[%s989_s3 + $0x28] sm:$0xff] }
   0xa   :  { %521 = vmatpush3.msra.mxu0 %v38_v6  ;;  %554 = vmatpush3.msra.mxu1 %v133_v10  ;;  %v129_v25 = vld [vmem:[%s989_s3 + $0x40] sm:$0xff]  ;;  %v124_v30 = vld [vmem:[%s989_s3 + $0x18] sm:$0xff]  ;;  %v123_v31 = vld [vmem:[%s989_s3 + $0x10] sm:$0xff] }
   0xb   :  { %522 = vmatprep.subr.mxu0 %v664_v0  ;;  %555 = vmatprep.subr.mxu1 %v664_v0  ;;  %v125_v29 = vld [vmem:[%s989_s3 + $0x20] sm:$0xff]  ;;  %v122_v32 = vld [vmem:[%s989_s3 + $0x8] sm:$0xff]  ;;  %v440_v34 = vld [vmem:[%s989_s3 + $0xf8] sm:$0xff] }
   0xc   :  { %523 = vmatpush3.msra.mxu0 %v37_v9  ;;  %556 = vmatpush3.msra.mxu1 %v132_v12  ;;  %v121_v33 = vld [vmem:[%s989_s3] sm:$0xff]  ;;  %v439_v35 = vld [vmem:[%s989_s3 + $0xf0] sm:$0xff]  ;;  %v438_v36 = vld [vmem:[%s989_s3 + $0xe8] sm:$0xff] }
   0xd   :  { %524 = vmatprep.subr.mxu0 %v664_v0  ;;  %557 = vmatprep.subr.mxu1 %v664_v0  ;;  %v437_v37 = vld [vmem:[%s989_s3 + $0xe0] sm:$0xff]  ;;  %v436_v38 = vld [vmem:[%s989_s3 + $0xd8] sm:$0xff]  ;;  %v435_v39 = vld [vmem:[%s989_s3 + $0xd0] sm:$0xff] }
   0xe   :  { %525 = vmatpush3.msra.mxu0 %v36_v11  ;;  %558 = vmatpush3.msra.mxu1 %v131_v14  ;;  %v434_v40 = vld [vmem:[%s989_s3 + $0xc8] sm:$0xff]  ;;  %v423_v41 = vld [vmem:[%s991_s2] ss:$0 sm:$0xff]  ;;  %v432_v47 = vld [vmem:[%s989_s3 + $0xb8] sm:$0xff] }
   0xf   :  { %526 = vmatprep.subr.mxu0 %v664_v0  ;;  %559 = vmatprep.subr.mxu1 %v664_v0  ;;  %v433_v46 = vld [vmem:[%s989_s3 + $0xc0] sm:$0xff]  ;;  %v431_v48 = vld [vmem:[%s989_s3 + $0xb0] sm:$0xff]  ;;  %v430_v49 = vld [vmem:[%s989_s3 + $0xa8] sm:$0xff] }
  0x10   :  { %527 = vmatpush3.msra.mxu0 %v35_v13  ;;  %560 = vmatpush3.msra.mxu1 %v130_v16  ;;  %v429_v50 = vld [vmem:[%s989_s3 + $0xa0] sm:$0xff]  ;;  %v428_v51 = vld [vmem:[%s989_s3 + $0x98] sm:$0xff]  ;;  %v427_v52 = vld [vmem:[%s989_s3 + $0x90] sm:$0xff] }
  0x11   :  { %528 = vmatprep.subr.mxu0 %v664_v0  ;;  %561 = vmatprep.subr.mxu1 %v664_v0  ;;  %v426_v53 = vld [vmem:[%s989_s3 + $0x88] sm:$0xff]  ;;  %v425_v54 = vld [vmem:[%s989_s3 + $0x80] sm:$0xff]  ;;  %v326_v55 = vld [vmem:[%s992_s5 + $0x78] sm:$0xff] }
  0x12   :  { %529 = vmatpush3.msra.mxu0 %v34_v15  ;;  %562 = vmatpush3.msra.mxu1 %v129_v25  ;;  %v325_v56 = vld [vmem:[%s992_s5 + $0x70] sm:$0xff]  ;;  %v324_v57 = vld [vmem:[%s992_s5 + $0x68] sm:$0xff]  ;;  %v323_v58 = vld [vmem:[%s992_s5 + $0x60] sm:$0xff] }
  0x13   :  { %530 = vmatprep.subr.mxu0 %v664_v0  ;;  %563 = vmatprep.subr.mxu1 %v664_v0  ;;  %v322_v59 = vld [vmem:[%s992_s5 + $0x58] sm:$0xff]  ;;  %v321_v60 = vld [vmem:[%s992_s5 + $0x50] sm:$0xff]  ;;  %v320_v61 = vld [vmem:[%s992_s5 + $0x48] sm:$0xff] }
  0x14   :  { %531 = vmatpush3.msra.mxu0 %v33_v17  ;;  %564 = vmatpush3.msra.mxu1 %v128_v26  ;;  %v424_v62 = vld [vmem:[%s993_s4] ss:$0 sm:$0xff]  ;;  %v318_v5 = vld [vmem:[%s992_s5 + $0x38] sm:$0xff]  ;;  %v317_v6 = vld [vmem:[%s992_s5 + $0x30] sm:$0xff] }
  0x15   :  { %532 = vmatprep.subr.mxu0 %v664_v0  ;;  %565 = vmatprep.subr.mxu1 %v664_v0  ;;  %v319_v4 = vld [vmem:[%s992_s5 + $0x40] sm:$0xff]  ;;  %v316_v7 = vld [vmem:[%s992_s5 + $0x28] sm:$0xff]  ;;  %v314_v9 = vld [vmem:[%s992_s5 + $0x18] sm:$0xff] }
  0x16   :  { %533 = vmatpush3.msra.mxu0 %v32_v18  ;;  %566 = vmatpush3.msra.mxu1 %v127_v27  ;;  %v315_v8 = vld [vmem:[%s992_s5 + $0x20] sm:$0xff]  ;;  %v313_v10 = vld [vmem:[%s992_s5 + $0x10] sm:$0xff]  ;;  %v312_v11 = vld [vmem:[%s992_s5 + $0x8] sm:$0xff]  ;;  %v404_v18 = vlaneseq }
  0x17   :  { %534 = vmatprep.subr.mxu0 %v664_v0  ;;  %567 = vmatprep.subr.mxu1 %v664_v0  ;;  %v311_v12 = vld [vmem:[%s992_s5] sm:$0xff] }
  0x18   :  { %535 = vmatpush3.msra.mxu0 %v31_v19  ;;  %568 = vmatpush3.msra.mxu1 %v126_v28  ;;  %v442_v13 = vld [vmem:[%s993_s4 + $0x1] ss:$0 sm:$0xff]  ;;  %v405_v19 = vand.u32 127, %v404_v18 }
  0x19   :  { %536 = vmatprep.subr.mxu0 %v664_v0  ;;  %569 = vmatprep.subr.mxu1 %v664_v0 }
  0x1a   :  { %537 = vmatpush3.msra.mxu0 %v30_v20  ;;  %570 = vmatpush3.msra.mxu1 %v125_v29  ;;  %v443_v20 = vld [vmem:[%s994_s6] ss:$0 sm:$0xff]  ;;  %vm406_vm1 = vcmp.lt.s32.totalorder %v405_v19, 8 }
  0x1b   :  { %538 = vmatprep.subr.mxu0 %v664_v0  ;;  %571 = vmatprep.subr.mxu1 %v664_v0 }
  0x1c   :  { %539 = vmatpush3.msra.mxu0 %v29_v21  ;;  %572 = vmatpush3.msra.mxu1 %v124_v30 }
  0x1d   :  { %540 = vmatprep.subr.mxu0 %v664_v0  ;;  %573 = vmatprep.subr.mxu1 %v664_v0 }
  0x1e   :  { %541 = vmatpush3.msra.mxu0 %v28_v22  ;;  %574 = vmatpush3.msra.mxu1 %v123_v31 }
  0x1f   :  { %542 = vmatprep.subr.mxu0 %v664_v0  ;;  %575 = vmatprep.subr.mxu1 %v664_v0 }
  0x20   :  { %543 = vmatpush3.msra.mxu0 %v27_v23  ;;  %576 = vmatpush3.msra.mxu1 %v122_v32 }
  0x21   :  { %545 = vmatmul.mubr.f32.vlgmr.msra.gmra.mxu0 %v26_v24  ;;  %582 = vmatprep.subr.mxu0 %v664_v0 }
  0x22   :  { %614 = vmatprep.mubr.msk.f32.mxu0 %vm665_vm0, %v664_v0  ;;  %577 = vmatprep.subr.mxu1 %v664_v0 }
  0x23   :  { %578 = vmatpush3.msra.mxu1 %v121_v33  ;;  %583 = vmatpush3.msra.mxu0 %v440_v34 }
  0x24   :  { %617 = vmatprep.subr.mxu1 %v664_v0  ;;  %584 = vmatprep.subr.mxu0 %v664_v0 }
  0x25   :  { %585 = vmatpush3.msra.mxu0 %v439_v35 }
  0x26   :  { %586 = vmatprep.subr.mxu0 %v664_v0 }
  0x27   :  { %587 = vmatpush3.msra.mxu0 %v438_v36 }
  0x28   :  { %588 = vmatprep.subr.mxu0 %v664_v0 }
  0x29   :  { %589 = vmatpush3.msra.mxu0 %v437_v37 }
  0x2a   :  { %590 = vmatprep.subr.mxu0 %v664_v0 }
  0x2b   :  { %591 = vmatpush3.msra.mxu0 %v436_v38 }
  0x2c   :  { %592 = vmatprep.subr.mxu0 %v664_v0 }
  0x2d   :  { %593 = vmatpush3.msra.mxu0 %v435_v39 }
  0x2e   :  { %594 = vmatprep.subr.mxu0 %v664_v0 }
  0x2f   :  { %595 = vmatpush3.msra.mxu0 %v434_v40 }
  0x30   :  { %596 = vmatprep.subr.mxu0 %v664_v0 }
  0x31   :  { %597 = vmatpush3.msra.mxu0 %v433_v46 }
  0x32   :  { %598 = vmatprep.subr.mxu0 %v664_v0 }
  0x33   :  { %599 = vmatpush3.msra.mxu0 %v432_v47 }
  0x34   :  { %600 = vmatprep.subr.mxu0 %v664_v0 }
  0x35   :  { %601 = vmatpush3.msra.mxu0 %v431_v48 }
  0x36   :  { %602 = vmatprep.subr.mxu0 %v664_v0 }
  0x37   :  { %603 = vmatpush3.msra.mxu0 %v430_v49 }
  0x38   :  { %604 = vmatprep.subr.mxu0 %v664_v0 }
  0x39   :  { %605 = vmatpush3.msra.mxu0 %v429_v50 }
  0x3a   :  { %606 = vmatprep.subr.mxu0 %v664_v0 }
  0x3b   :  { %607 = vmatpush3.msra.mxu0 %v428_v51 }
  0x3c   :  { %608 = vmatprep.subr.mxu0 %v664_v0 }
  0x3d   :  { %609 = vmatpush3.msra.mxu0 %v427_v52 }
  0x3e   :  { %610 = vmatprep.subr.mxu0 %v664_v0 }
  0x3f   :  { %611 = vmatpush3.msra.mxu0 %v426_v53 }
  0x40   :  { %612 = vmatprep.subr.mxu0 %v664_v0 }
  0x41   :  { %613 = vmatpush3.msra.mxu0 %v425_v54 }
  0xe1   :  { %v116_v42 = vpop.f32.mrf.mxu0 }
  0xe2   :  { %v117_v43 = vadd.f32 %v423_v41, %v116_v42 }
  0xe3   :  { %v546_v44 = vpop.f32.mrf.mxu0 }
  0xe4   :  { %654 = vtanh.f32 %v117_v43 }
  0xf1   :  { %v655_v45 = vpop.eup %654 }
  0xf2   :  { %580 = vmatmul.mubr.f32.vlgmr.msra.gmra.mxu1 %v655_v45 }
  0xf3   :  { %649 = vmatprep.mubr.msk.f32.mxu1 %vm665_vm0, %v664_v0  ;;  %618 = vmatpush3.msra.mxu1 %v326_v55 }
  0xf4   :  { %619 = vmatprep.subr.mxu1 %v664_v0 }
  0xf5   :  { %620 = vmatpush3.msra.mxu1 %v325_v56 }
  0xf6   :  { %621 = vmatprep.subr.mxu1 %v664_v0 }
  0xf7   :  { %622 = vmatpush3.msra.mxu1 %v324_v57 }
  0xf8   :  { %623 = vmatprep.subr.mxu1 %v664_v0 }
  0xf9   :  { %624 = vmatpush3.msra.mxu1 %v323_v58 }
  0xfa   :  { %625 = vmatprep.subr.mxu1 %v664_v0 }
  0xfb   :  { %626 = vmatpush3.msra.mxu1 %v322_v59 }
  0xfc   :  { %627 = vmatprep.subr.mxu1 %v664_v0 }
  0xfd   :  { %628 = vmatpush3.msra.mxu1 %v321_v60 }
  0xfe   :  { %629 = vmatprep.subr.mxu1 %v664_v0 }
  0xff   :  { %630 = vmatpush3.msra.mxu1 %v320_v61 }
 0x100   :  { %631 = vmatprep.subr.mxu1 %v664_v0 }
 0x101   :  { %632 = vmatpush3.msra.mxu1 %v319_v4 }
 0x102   :  { %633 = vmatprep.subr.mxu1 %v664_v0 }
 0x103   :  { %634 = vmatpush3.msra.mxu1 %v318_v5 }
 0x104   :  { %635 = vmatprep.subr.mxu1 %v664_v0 }
 0x105   :  { %636 = vmatpush3.msra.mxu1 %v317_v6 }
 0x106   :  { %637 = vmatprep.subr.mxu1 %v664_v0 }
 0x107   :  { %638 = vmatpush3.msra.mxu1 %v316_v7 }
 0x108   :  { %639 = vmatprep.subr.mxu1 %v664_v0 }
 0x109   :  { %640 = vmatpush3.msra.mxu1 %v315_v8 }
 0x10a   :  { %641 = vmatprep.subr.mxu1 %v664_v0 }
 0x10b   :  { %642 = vmatpush3.msra.mxu1 %v314_v9 }
 0x10c   :  { %643 = vmatprep.subr.mxu1 %v664_v0 }
 0x10d   :  { %644 = vmatpush3.msra.mxu1 %v313_v10 }
 0x10e   :  { %645 = vmatprep.subr.mxu1 %v664_v0 }
 0x10f   :  { %646 = vmatpush3.msra.mxu1 %v312_v11 }
 0x110   :  { %647 = vmatprep.subr.mxu1 %v664_v0 }
 0x111   :  { %648 = vmatpush3.msra.mxu1 %v311_v12 }
 0x1b2   :  { %v210_v63 = vpop.f32.mrf.mxu1 }
 0x1b3   :  { %v211_v1 = vadd.f32 %v424_v62, %v210_v63 }
 0x1b4   :  { %v581_v2 = vpop.f32.mrf.mxu1 }
 0x1b5   :  { %656 = vtanh.f32 %v211_v1 }
 0x1c2   :  { %v657_v3 = vpop.eup %656 }
 0x1c3   :  { %615 = vmatmul.mubr.f32.vlgmr.msra.gmra.mxu0 %v657_v3 }
 0x283   :  { %v306_v14 = vpop.f32.mrf.mxu0 }
 0x284   :  { %v307_v15 = vadd.f32 %v442_v13, %v306_v14 }
 0x285   :  { %v616_v16 = vpop.f32.mrf.mxu0 }
 0x286   :  { %658 = vtanh.f32 %v307_v15 }
 0x293   :  { %v659_v17 = vpop.eup %658 }
 0x294   :  { %650 = vmatmul.mubr.f32.vlgmr.msra.gmra.mxu1 %v659_v17 }
 0x354   :  { %v400_v21 = vpop.f32.mrf.mxu1 }
 0x355   :  { %v401_v0 = vadd.f32 %v443_v20, %v400_v21 }
 0x356   :  { %v651_v22 = vpop.f32.mrf.mxu1 }
 0x357   :  { %v407_v23 = vsel %vm406_vm1, %v401_v0, -inf }
 0x358   :  { %408 = vmax.xlane.f32.xlu0 %v407_v23 }
 0x3e1   :  { %v409_v24 = vpop.xlane.xlu0 %408 }
 0x3e2   :  { %v410_v25 = vsub.f32 %v401_v0, %v409_v24 }
 0x3e4   :  { %v411_v26 = vmul.f32 1.442695, %v410_v25 }
 0x3e6   :  { %660 = vpow2.f32 %v411_v26 }
 0x3f3   :  { %v661_v27 = vpop.eup %660 }
 0x3f4   :  { %v413_v28 = vsel %vm406_vm1, %v661_v27, 0.0 }
 0x3f5   :  { %414 = vadd.xlane.f32.xlu0 %v413_v28 }
 0x47e   :  { %v415_v29 = vpop.xlane.xlu0 %414 }
 0x47f   :  { %662 = vrcp.f32 %v415_v29 }
 0x48c   :  { %v663_v30 = vpop.eup %662 }
 0x48d   :  { %v417_v31 = vmul.f32 %v663_v30, %v413_v28 }
 0x48f   :  { %418 = vst [vmem:[%s995_s7] sm:$0xff] %v417_v31 }

</bundles_post_ra>
